<compile_context>
chip_gen: v6e
topology: v6e:2x2x1
jax: 0.10.0
libtpu: 0.0.40
codegen_flags: <defaults>
</compile_context>

<pallas_src>
import functools
import math

import jax
import jax.numpy as jnp
import numpy as np
from jax.experimental import pallas as pl
from jax.experimental.pallas import tpu as pltpu


# ----------------------------- configuration --------------------------------
class Config:
    hidden_size = 32
    num_attention_heads = 4
    position_dimensions = 8
    attention_probs_dropout_prob = 0.0


# ------------------------------- kernel --------------------------------------
def _attn_kernel(x_ref, mask_ref, wq_ref, bq_ref, wk_ref, bk_ref, wv_ref, bv_ref,
                 out_ref, *, num_heads, head_size, pos_head_dim, sem_head_dim):
    nh, hd = num_heads, head_size
    pd, sd = pos_head_dim, sem_head_dim
    vd = pd + sd

    x = x_ref[0]                       # (S, H)  bf16 (cast in wrapper)
    mask = mask_ref[0]                 # (1, S)  f32 additive mask

    # Flat projections: one full-width MXU matmul each (bf16 in, f32 acc),
    # then a single cast to bf16 and a bf16 bias add.  wq/bq already carry
    # the 1/sqrt(hd) scale (folded at trace time).  The packed value weight
    # fuses value_pos | value_sem per head with zero rows for the features
    # each sub-projection does not read, so one full-H matmul reproduces both.
    q = jnp.dot(x, wq_ref[...],
                preferred_element_type=jnp.float32).astype(jnp.bfloat16) + bq_ref[...]
    k = jnp.dot(x, wk_ref[...],
                preferred_element_type=jnp.float32).astype(jnp.bfloat16) + bk_ref[...]
    v = jnp.dot(x, wv_ref[...],
                preferred_element_type=jnp.float32).astype(jnp.bfloat16) + bv_ref[...]

    pos_parts = []
    sem_parts = []
    # Heads are split only where the scores matmul needs it: a static,
    # fully-unrolled loop over nh with static lane slices (no replication,
    # no per-head weight operands).
    for h in range(nh):
        qh = q[:, h * hd:(h + 1) * hd]                                 # (S, hd)
        kh = k[:, h * hd:(h + 1) * hd]                                 # (S, hd)
        vh = v[:, h * vd:(h + 1) * vd]                                 # (S, vd) = [pos|sem]

        s = jnp.einsum("qd,kd->qk", qh, kh,
                       preferred_element_type=jnp.float32)             # (S, S) f32
        s = s + mask                                                   # broadcast (1,S)

        # softmax over keys in f32 (exp on the EUP, approx reciprocal).
        m = jnp.max(s, axis=-1, keepdims=True)
        e = jnp.exp(s - m)
        p = e * pl.reciprocal(jnp.sum(e, axis=-1, keepdims=True), approx=True)

        # TODO(synk): nn.Dropout(attention_probs) is identity (eval mode).

        ctx = jnp.dot(p.astype(jnp.bfloat16), vh,
                      preferred_element_type=jnp.float32)              # (S, vd) f32
        pos_parts.append(ctx[:, :pd])
        sem_parts.append(ctx[:, pd:])

    # One lane-dense store per grid step, directly in the module's output
    # layout [pos(all heads) | sem(all heads)]  ->  (S, nh*(pd+sd)).
    # (At real BERT sizes nh*(pd+sd) >= 128, i.e. an unmasked vst.)
    out_ref[0] = jnp.concatenate(pos_parts + sem_parts, axis=-1)


# ------------------------------- wrapper --------------------------------------
def bert_dim_pos_extrapol_self_attention(hidden_states, attention_mask, params, cfg):
    B, S, H = hidden_states.shape
    nh = cfg.num_attention_heads
    hd = H // nh
    P = cfg.position_dimensions
    sem = H - P
    pd = round(hd * P / H)
    sd = round(hd * sem / H)
    vd = pd + sd
    scale = 1.0 / math.sqrt(hd)

    f32, bf16 = jnp.float32, jnp.bfloat16

    # ---- trace-time weight prep (pure layout plumbing on tiny tensors) -------
    wq = (params["wq"] * scale).astype(bf16)          # scale folded into Q proj
    bq = (params["bq"] * scale).astype(bf16)
    wk = params["wk"].astype(bf16)
    bk = params["bk"].astype(bf16)

    # Packed per-head value weight (H, nh*vd): column block h = [pos_h | sem_h];
    # value_pos reads hidden[:, :, :P] and value_sem reads hidden[:, :, P:], so
    # the complementary rows are zero and one full-H matmul reproduces both.
    # TODO(synk): ~(P*sd + sem*pd)/(H*vd) of this contraction is over zero rows;
    #             repack features if the projection ever becomes MXU-bound.
    wvp3 = params["wvp"].reshape(P, nh, pd)
    wvs3 = params["wvs"].reshape(sem, nh, sd)
    wv = jnp.zeros((H, nh, vd), f32)
    wv = wv.at[:P, :, :pd].set(wvp3)
    wv = wv.at[P:, :, pd:].set(wvs3)
    wv = wv.reshape(H, nh * vd).astype(bf16)
    bv = jnp.concatenate([params["bvp"].reshape(1, nh, pd),
                          params["bvs"].reshape(1, nh, sd)],
                         axis=-1).reshape(1, nh * vd).astype(bf16)

    x = hidden_states.astype(bf16)                    # halve activation DMA bytes
    mask = attention_mask.astype(f32).reshape(B, 1, S)

    kernel = functools.partial(_attn_kernel, num_heads=nh, head_size=hd,
                               pos_head_dim=pd, sem_head_dim=sd)

    def full_spec(shape):
        return pl.BlockSpec(shape, lambda b, _s=shape: (0,) * len(_s))

    out = pl.pallas_call(
        kernel,
        out_shape=jax.ShapeDtypeStruct((B, S, nh * vd), jnp.float32),
        grid=(B,),
        in_specs=[
            pl.BlockSpec((1, S, H), lambda b: (b, 0, 0)),        # hidden states
            pl.BlockSpec((1, 1, S), lambda b: (b, 0, 0)),        # additive mask
            full_spec((H, H)), full_spec((1, H)),                # wq, bq
            full_spec((H, H)), full_spec((1, H)),                # wk, bk
            full_spec((H, nh * vd)), full_spec((1, nh * vd)),    # wv, bv (packed)
        ],
        out_specs=pl.BlockSpec((1, S, nh * vd), lambda b: (b, 0, 0)),
        compiler_params=pltpu.CompilerParams(
            dimension_semantics=("parallel",),        # megacore sharding on v7x
            vmem_limit_bytes=32 * 1024 * 1024,
        ),
    )(x, mask, wq, bq, wk, bk, wv, bv)

    return out                                        # (B, S, nh*(pd+sd)), module layout


# ---------------------------- pure-JAX reference ------------------------------
def reference(hidden_states, attention_mask, params, cfg):
    B, S, H = hidden_states.shape
    nh = cfg.num_attention_heads
    hd = H // nh
    P = cfg.position_dimensions
    sem = H - P
    pd = round(hd * P / H)
    sd = round(hd * sem / H)

    p = hidden_states[:, :, :P]
    s = hidden_states[:, :, P:]
    q = hidden_states @ params["wq"] + params["bq"][0]
    k = hidden_states @ params["wk"] + params["bk"][0]
    q = q.reshape(B, S, nh, hd).transpose(0, 2, 1, 3)
    k = k.reshape(B, S, nh, hd).transpose(0, 2, 1, 3)
    scores = jnp.einsum("bhqd,bhkd->bhqk", q, k) / math.sqrt(hd)
    scores = scores + attention_mask
    probs = jax.nn.softmax(scores, axis=-1)
    v_sem = (s @ params["wvs"] + params["bvs"][0]).reshape(B, S, nh, sd).transpose(0, 2, 1, 3)
    v_pos = (p @ params["wvp"] + params["bvp"][0]).reshape(B, S, nh, pd).transpose(0, 2, 1, 3)
    sem_ctx = jnp.einsum("bhqk,bhkd->bhqd", probs, v_sem).transpose(0, 2, 1, 3).reshape(B, S, -1)
    pos_ctx = jnp.einsum("bhqk,bhkd->bhqd", probs, v_pos).transpose(0, 2, 1, 3).reshape(B, S, -1)
    return jnp.concatenate([pos_ctx, sem_ctx], axis=-1)


# --------------------------------- main ---------------------------------------
if __name__ == "__main__":
    cfg = Config()
    B, S, H = 2, 8, cfg.hidden_size
    nh = cfg.num_attention_heads
    hd = H // nh
    P = cfg.position_dimensions
    sem = H - P
    pd = round(hd * P / H)
    sd = round(hd * sem / H)

    key = jax.random.PRNGKey(0)
    ks = jax.random.split(key, 12)

    params = {
        "wq":  0.05 * jax.random.normal(ks[0], (H, H), jnp.float32),
        "bq":  0.05 * jax.random.normal(ks[1], (1, H), jnp.float32),
        "wk":  0.05 * jax.random.normal(ks[2], (H, H), jnp.float32),
        "bk":  0.05 * jax.random.normal(ks[3], (1, H), jnp.float32),
        "wvp": 0.05 * jax.random.normal(ks[4], (P, nh * pd), jnp.float32),
        "bvp": 0.05 * jax.random.normal(ks[5], (1, nh * pd), jnp.float32),
        "wvs": 0.05 * jax.random.normal(ks[6], (sem, nh * sd), jnp.float32),
        "bvs": 0.05 * jax.random.normal(ks[7], (1, nh * sd), jnp.float32),
    }

    hidden_states = jax.random.normal(ks[8], (B, S, H), jnp.float32)
    # additive BERT-style mask: mask out the last two key positions of batch 1
    mask = jnp.zeros((B, 1, 1, S), jnp.float32)
    mask = mask.at[1, 0, 0, -2:].set(-1e9)

    out = bert_dim_pos_extrapol_self_attention(hidden_states, mask, params, cfg)
    out = jax.block_until_ready(out)

    ref = reference(hidden_states, mask, params, cfg)
    # Tolerance reflects intentional bf16 MXU inputs / bf16 bias adds and the
    # approx EUP reciprocal in the softmax; the f32 reference stays exact.
    np.testing.assert_allclose(np.asarray(out), np.asarray(ref), rtol=2e-2, atol=2e-2)

    print("KERNEL_OK")
</pallas_src>

<mosaic_0001>
module attributes {stable_mosaic.version = 11 : i64} {
  func.func @_attn_kernel(%arg0: i32, %arg1: memref<1x8x32xbf16, #tpu.memory_space<vmem>>, %arg2: memref<1x1x8xf32, #tpu.memory_space<vmem>>, %arg3: memref<32x32xbf16, #tpu.memory_space<vmem>>, %arg4: memref<1x32xbf16, #tpu.memory_space<vmem>>, %arg5: memref<32x32xbf16, #tpu.memory_space<vmem>>, %arg6: memref<1x32xbf16, #tpu.memory_space<vmem>>, %arg7: memref<32x32xbf16, #tpu.memory_space<vmem>>, %arg8: memref<1x32xbf16, #tpu.memory_space<vmem>>, %arg9: memref<1x8x32xf32, #tpu.memory_space<vmem>>) attributes {dimension_semantics = [#tpu.dimension_semantics<parallel>], iteration_bounds = array<i64: 2>, scalar_prefetch = 0 : i64, scratch_operands = 0 : i64, tpu.core_type = #tpu.core_type<tc>, window_params = [{transform_indices = @transform_0, window_bounds = array<i64: 1, 8, 32>}, {transform_indices = @transform_1, window_bounds = array<i64: 1, 1, 8>}, {pipeline_mode = #tpu.pipeline_mode<synchronous>, transform_indices = @transform_2, window_bounds = array<i64: 32, 32>}, {pipeline_mode = #tpu.pipeline_mode<synchronous>, transform_indices = @transform_3, window_bounds = array<i64: 1, 32>}, {pipeline_mode = #tpu.pipeline_mode<synchronous>, transform_indices = @transform_4, window_bounds = array<i64: 32, 32>}, {pipeline_mode = #tpu.pipeline_mode<synchronous>, transform_indices = @transform_5, window_bounds = array<i64: 1, 32>}, {pipeline_mode = #tpu.pipeline_mode<synchronous>, transform_indices = @transform_6, window_bounds = array<i64: 32, 32>}, {pipeline_mode = #tpu.pipeline_mode<synchronous>, transform_indices = @transform_7, window_bounds = array<i64: 1, 32>}, {transform_indices = @transform_8, window_bounds = array<i64: 1, 8, 32>}]} {
    %c0 = arith.constant 0 : index
    %c0_0 = arith.constant 0 : index
    %c0_1 = arith.constant 0 : index
    %0 = vector.load %arg1[%c0, %c0_0, %c0_1] : memref<1x8x32xbf16, #tpu.memory_space<vmem>>, vector<1x8x32xbf16>
    %1 = vector.shape_cast %0 : vector<1x8x32xbf16> to vector<8x32xbf16>
    %c0_2 = arith.constant 0 : index
    %c0_3 = arith.constant 0 : index
    %c0_4 = arith.constant 0 : index
    %2 = vector.load %arg2[%c0_2, %c0_3, %c0_4] : memref<1x1x8xf32, #tpu.memory_space<vmem>>, vector<1x1x8xf32>
    %3 = vector.shape_cast %2 : vector<1x1x8xf32> to vector<1x8xf32>
    %c0_5 = arith.constant 0 : index
    %c0_6 = arith.constant 0 : index
    %4 = vector.load %arg3[%c0_5, %c0_6] : memref<32x32xbf16, #tpu.memory_space<vmem>>, vector<32x32xbf16>
    %cst = arith.constant dense<0.000000e+00> : vector<8x32xf32>
    %5 = tpu.matmul %1, %4, %cst {dimension_numbers = #tpu.dot_dimension_numbers<[1], [0], [0], [1], [0, 0, 1, 1], [], []>} : vector<8x32xbf16>, vector<32x32xbf16>, vector<8x32xf32> -> vector<8x32xf32>
    %6 = arith.truncf %5 : vector<8x32xf32> to vector<8x32xbf16>
    %c0_7 = arith.constant 0 : index
    %c0_8 = arith.constant 0 : index
    %7 = vector.load %arg4[%c0_7, %c0_8] : memref<1x32xbf16, #tpu.memory_space<vmem>>, vector<1x32xbf16>
    %8 = vector.broadcast %7 : vector<1x32xbf16> to vector<8x32xbf16>
    %9 = arith.addf %6, %8 : vector<8x32xbf16>
    %c0_9 = arith.constant 0 : index
    %c0_10 = arith.constant 0 : index
    %10 = vector.load %arg5[%c0_9, %c0_10] : memref<32x32xbf16, #tpu.memory_space<vmem>>, vector<32x32xbf16>
    %cst_11 = arith.constant dense<0.000000e+00> : vector<8x32xf32>
    %11 = tpu.matmul %1, %10, %cst_11 {dimension_numbers = #tpu.dot_dimension_numbers<[1], [0], [0], [1], [0, 0, 1, 1], [], []>} : vector<8x32xbf16>, vector<32x32xbf16>, vector<8x32xf32> -> vector<8x32xf32>
    %12 = arith.truncf %11 : vector<8x32xf32> to vector<8x32xbf16>
    %c0_12 = arith.constant 0 : index
    %c0_13 = arith.constant 0 : index
    %13 = vector.load %arg6[%c0_12, %c0_13] : memref<1x32xbf16, #tpu.memory_space<vmem>>, vector<1x32xbf16>
    %14 = vector.broadcast %13 : vector<1x32xbf16> to vector<8x32xbf16>
    %15 = arith.addf %12, %14 : vector<8x32xbf16>
    %c0_14 = arith.constant 0 : index
    %c0_15 = arith.constant 0 : index
    %16 = vector.load %arg7[%c0_14, %c0_15] : memref<32x32xbf16, #tpu.memory_space<vmem>>, vector<32x32xbf16>
    %cst_16 = arith.constant dense<0.000000e+00> : vector<8x32xf32>
    %17 = tpu.matmul %1, %16, %cst_16 {dimension_numbers = #tpu.dot_dimension_numbers<[1], [0], [0], [1], [0, 0, 1, 1], [], []>} : vector<8x32xbf16>, vector<32x32xbf16>, vector<8x32xf32> -> vector<8x32xf32>
    %18 = arith.truncf %17 : vector<8x32xf32> to vector<8x32xbf16>
    %c0_17 = arith.constant 0 : index
    %c0_18 = arith.constant 0 : index
    %19 = vector.load %arg8[%c0_17, %c0_18] : memref<1x32xbf16, #tpu.memory_space<vmem>>, vector<1x32xbf16>
    %20 = vector.broadcast %19 : vector<1x32xbf16> to vector<8x32xbf16>
    %21 = arith.addf %18, %20 : vector<8x32xbf16>
    %22 = vector.extract_strided_slice %9 {offsets = [0, 0], sizes = [8, 8], strides = [1, 1]} : vector<8x32xbf16> to vector<8x8xbf16>
    %23 = vector.extract_strided_slice %15 {offsets = [0, 0], sizes = [8, 8], strides = [1, 1]} : vector<8x32xbf16> to vector<8x8xbf16>
    %24 = vector.extract_strided_slice %21 {offsets = [0, 0], sizes = [8, 8], strides = [1, 1]} : vector<8x32xbf16> to vector<8x8xbf16>
    "tpu.trace_start"() <{level = 10 : i32, message = "qd,kd->qk"}> : () -> ()
    %cst_19 = arith.constant dense<0.000000e+00> : vector<8x8xf32>
    %25 = tpu.matmul %22, %23, %cst_19 {dimension_numbers = #tpu.dot_dimension_numbers<[1], [1], [0], [0], [0, 0, 1, 0], [], []>} : vector<8x8xbf16>, vector<8x8xbf16>, vector<8x8xf32> -> vector<8x8xf32>
    "tpu.trace_stop"() : () -> ()
    %26 = vector.broadcast %3 : vector<1x8xf32> to vector<8x8xf32>
    %27 = arith.addf %25, %26 : vector<8x8xf32>
    %cst_20 = arith.constant dense<0xFF800000> : vector<8xf32>
    %28 = vector.multi_reduction <maximumf>, %27, %cst_20 [1] : vector<8x8xf32> to vector<8xf32>
    %29 = vector.shape_cast %28 : vector<8xf32> to vector<8x1xf32>
    %30 = vector.broadcast %29 : vector<8x1xf32> to vector<8x8xf32>
    %31 = arith.subf %27, %30 : vector<8x8xf32>
    %32 = math.exp %31 : vector<8x8xf32>
    %cst_21 = arith.constant dense<0.000000e+00> : vector<8xf32>
    %33 = vector.multi_reduction <add>, %32, %cst_21 [1] : vector<8x8xf32> to vector<8xf32>
    %34 = vector.shape_cast %33 : vector<8xf32> to vector<8x1xf32>
    %35 = tpu.reciprocal %34 {approx = true} : vector<8x1xf32> -> vector<8x1xf32>
    %36 = vector.broadcast %35 : vector<8x1xf32> to vector<8x8xf32>
    %37 = arith.mulf %32, %36 : vector<8x8xf32>
    %38 = arith.truncf %37 : vector<8x8xf32> to vector<8x8xbf16>
    %cst_22 = arith.constant dense<0.000000e+00> : vector<8x8xf32>
    %39 = tpu.matmul %38, %24, %cst_22 {dimension_numbers = #tpu.dot_dimension_numbers<[1], [0], [0], [1], [0, 0, 1, 1], [], []>} : vector<8x8xbf16>, vector<8x8xbf16>, vector<8x8xf32> -> vector<8x8xf32>
    %40 = vector.extract_strided_slice %39 {offsets = [0, 0], sizes = [8, 2], strides = [1, 1]} : vector<8x8xf32> to vector<8x2xf32>
    %41 = vector.extract_strided_slice %39 {offsets = [0, 2], sizes = [8, 6], strides = [1, 1]} : vector<8x8xf32> to vector<8x6xf32>
    %42 = vector.extract_strided_slice %9 {offsets = [0, 8], sizes = [8, 8], strides = [1, 1]} : vector<8x32xbf16> to vector<8x8xbf16>
    %43 = vector.extract_strided_slice %15 {offsets = [0, 8], sizes = [8, 8], strides = [1, 1]} : vector<8x32xbf16> to vector<8x8xbf16>
    %44 = vector.extract_strided_slice %21 {offsets = [0, 8], sizes = [8, 8], strides = [1, 1]} : vector<8x32xbf16> to vector<8x8xbf16>
    "tpu.trace_start"() <{level = 10 : i32, message = "qd,kd->qk"}> : () -> ()
    %cst_23 = arith.constant dense<0.000000e+00> : vector<8x8xf32>
    %45 = tpu.matmul %42, %43, %cst_23 {dimension_numbers = #tpu.dot_dimension_numbers<[1], [1], [0], [0], [0, 0, 1, 0], [], []>} : vector<8x8xbf16>, vector<8x8xbf16>, vector<8x8xf32> -> vector<8x8xf32>
    "tpu.trace_stop"() : () -> ()
    %46 = vector.broadcast %3 : vector<1x8xf32> to vector<8x8xf32>
    %47 = arith.addf %45, %46 : vector<8x8xf32>
    %cst_24 = arith.constant dense<0xFF800000> : vector<8xf32>
    %48 = vector.multi_reduction <maximumf>, %47, %cst_24 [1] : vector<8x8xf32> to vector<8xf32>
    %49 = vector.shape_cast %48 : vector<8xf32> to vector<8x1xf32>
    %50 = vector.broadcast %49 : vector<8x1xf32> to vector<8x8xf32>
    %51 = arith.subf %47, %50 : vector<8x8xf32>
    %52 = math.exp %51 : vector<8x8xf32>
    %cst_25 = arith.constant dense<0.000000e+00> : vector<8xf32>
    %53 = vector.multi_reduction <add>, %52, %cst_25 [1] : vector<8x8xf32> to vector<8xf32>
    %54 = vector.shape_cast %53 : vector<8xf32> to vector<8x1xf32>
    %55 = tpu.reciprocal %54 {approx = true} : vector<8x1xf32> -> vector<8x1xf32>
    %56 = vector.broadcast %55 : vector<8x1xf32> to vector<8x8xf32>
    %57 = arith.mulf %52, %56 : vector<8x8xf32>
    %58 = arith.truncf %57 : vector<8x8xf32> to vector<8x8xbf16>
    %cst_26 = arith.constant dense<0.000000e+00> : vector<8x8xf32>
    %59 = tpu.matmul %58, %44, %cst_26 {dimension_numbers = #tpu.dot_dimension_numbers<[1], [0], [0], [1], [0, 0, 1, 1], [], []>} : vector<8x8xbf16>, vector<8x8xbf16>, vector<8x8xf32> -> vector<8x8xf32>
    %60 = vector.extract_strided_slice %59 {offsets = [0, 0], sizes = [8, 2], strides = [1, 1]} : vector<8x8xf32> to vector<8x2xf32>
    %61 = vector.extract_strided_slice %59 {offsets = [0, 2], sizes = [8, 6], strides = [1, 1]} : vector<8x8xf32> to vector<8x6xf32>
    %62 = vector.extract_strided_slice %9 {offsets = [0, 16], sizes = [8, 8], strides = [1, 1]} : vector<8x32xbf16> to vector<8x8xbf16>
    %63 = vector.extract_strided_slice %15 {offsets = [0, 16], sizes = [8, 8], strides = [1, 1]} : vector<8x32xbf16> to vector<8x8xbf16>
    %64 = vector.extract_strided_slice %21 {offsets = [0, 16], sizes = [8, 8], strides = [1, 1]} : vector<8x32xbf16> to vector<8x8xbf16>
    "tpu.trace_start"() <{level = 10 : i32, message = "qd,kd->qk"}> : () -> ()
    %cst_27 = arith.constant dense<0.000000e+00> : vector<8x8xf32>
    %65 = tpu.matmul %62, %63, %cst_27 {dimension_numbers = #tpu.dot_dimension_numbers<[1], [1], [0], [0], [0, 0, 1, 0], [], []>} : vector<8x8xbf16>, vector<8x8xbf16>, vector<8x8xf32> -> vector<8x8xf32>
    "tpu.trace_stop"() : () -> ()
    %66 = vector.broadcast %3 : vector<1x8xf32> to vector<8x8xf32>
    %67 = arith.addf %65, %66 : vector<8x8xf32>
    %cst_28 = arith.constant dense<0xFF800000> : vector<8xf32>
    %68 = vector.multi_reduction <maximumf>, %67, %cst_28 [1] : vector<8x8xf32> to vector<8xf32>
    %69 = vector.shape_cast %68 : vector<8xf32> to vector<8x1xf32>
    %70 = vector.broadcast %69 : vector<8x1xf32> to vector<8x8xf32>
    %71 = arith.subf %67, %70 : vector<8x8xf32>
    %72 = math.exp %71 : vector<8x8xf32>
    %cst_29 = arith.constant dense<0.000000e+00> : vector<8xf32>
    %73 = vector.multi_reduction <add>, %72, %cst_29 [1] : vector<8x8xf32> to vector<8xf32>
    %74 = vector.shape_cast %73 : vector<8xf32> to vector<8x1xf32>
    %75 = tpu.reciprocal %74 {approx = true} : vector<8x1xf32> -> vector<8x1xf32>
    %76 = vector.broadcast %75 : vector<8x1xf32> to vector<8x8xf32>
    %77 = arith.mulf %72, %76 : vector<8x8xf32>
    %78 = arith.truncf %77 : vector<8x8xf32> to vector<8x8xbf16>
    %cst_30 = arith.constant dense<0.000000e+00> : vector<8x8xf32>
    %79 = tpu.matmul %78, %64, %cst_30 {dimension_numbers = #tpu.dot_dimension_numbers<[1], [0], [0], [1], [0, 0, 1, 1], [], []>} : vector<8x8xbf16>, vector<8x8xbf16>, vector<8x8xf32> -> vector<8x8xf32>
    %80 = vector.extract_strided_slice %79 {offsets = [0, 0], sizes = [8, 2], strides = [1, 1]} : vector<8x8xf32> to vector<8x2xf32>
    %81 = vector.extract_strided_slice %79 {offsets = [0, 2], sizes = [8, 6], strides = [1, 1]} : vector<8x8xf32> to vector<8x6xf32>
    %82 = vector.extract_strided_slice %9 {offsets = [0, 24], sizes = [8, 8], strides = [1, 1]} : vector<8x32xbf16> to vector<8x8xbf16>
    %83 = vector.extract_strided_slice %15 {offsets = [0, 24], sizes = [8, 8], strides = [1, 1]} : vector<8x32xbf16> to vector<8x8xbf16>
    %84 = vector.extract_strided_slice %21 {offsets = [0, 24], sizes = [8, 8], strides = [1, 1]} : vector<8x32xbf16> to vector<8x8xbf16>
    "tpu.trace_start"() <{level = 10 : i32, message = "qd,kd->qk"}> : () -> ()
    %cst_31 = arith.constant dense<0.000000e+00> : vector<8x8xf32>
    %85 = tpu.matmul %82, %83, %cst_31 {dimension_numbers = #tpu.dot_dimension_numbers<[1], [1], [0], [0], [0, 0, 1, 0], [], []>} : vector<8x8xbf16>, vector<8x8xbf16>, vector<8x8xf32> -> vector<8x8xf32>
    "tpu.trace_stop"() : () -> ()
    %86 = vector.broadcast %3 : vector<1x8xf32> to vector<8x8xf32>
    %87 = arith.addf %85, %86 : vector<8x8xf32>
    %cst_32 = arith.constant dense<0xFF800000> : vector<8xf32>
    %88 = vector.multi_reduction <maximumf>, %87, %cst_32 [1] : vector<8x8xf32> to vector<8xf32>
    %89 = vector.shape_cast %88 : vector<8xf32> to vector<8x1xf32>
    %90 = vector.broadcast %89 : vector<8x1xf32> to vector<8x8xf32>
    %91 = arith.subf %87, %90 : vector<8x8xf32>
    %92 = math.exp %91 : vector<8x8xf32>
    %cst_33 = arith.constant dense<0.000000e+00> : vector<8xf32>
    %93 = vector.multi_reduction <add>, %92, %cst_33 [1] : vector<8x8xf32> to vector<8xf32>
    %94 = vector.shape_cast %93 : vector<8xf32> to vector<8x1xf32>
    %95 = tpu.reciprocal %94 {approx = true} : vector<8x1xf32> -> vector<8x1xf32>
    %96 = vector.broadcast %95 : vector<8x1xf32> to vector<8x8xf32>
    %97 = arith.mulf %92, %96 : vector<8x8xf32>
    %98 = arith.truncf %97 : vector<8x8xf32> to vector<8x8xbf16>
    %cst_34 = arith.constant dense<0.000000e+00> : vector<8x8xf32>
    %99 = tpu.matmul %98, %84, %cst_34 {dimension_numbers = #tpu.dot_dimension_numbers<[1], [0], [0], [1], [0, 0, 1, 1], [], []>} : vector<8x8xbf16>, vector<8x8xbf16>, vector<8x8xf32> -> vector<8x8xf32>
    %100 = vector.extract_strided_slice %99 {offsets = [0, 0], sizes = [8, 2], strides = [1, 1]} : vector<8x8xf32> to vector<8x2xf32>
    %101 = vector.extract_strided_slice %99 {offsets = [0, 2], sizes = [8, 6], strides = [1, 1]} : vector<8x8xf32> to vector<8x6xf32>
    %102 = tpu.concatenate %40, %60, %80, %100, %41, %61, %81, %101 in 1 : vector<8x2xf32>, vector<8x2xf32>, vector<8x2xf32>, vector<8x2xf32>, vector<8x6xf32>, vector<8x6xf32>, vector<8x6xf32>, vector<8x6xf32> -> vector<8x32xf32>
    %c0_35 = arith.constant 0 : index
    %c0_36 = arith.constant 0 : index
    %c0_37 = arith.constant 0 : index
    %103 = vector.load %arg9[%c0_35, %c0_36, %c0_37] : memref<1x8x32xf32, #tpu.memory_space<vmem>>, vector<1x8x32xf32>
    %104 = vector.shape_cast %103 : vector<1x8x32xf32> to vector<8x32xf32>
    %105 = vector.shape_cast %102 : vector<8x32xf32> to vector<1x8x32xf32>
    tpu.vector_store %arg9[%c0_35, %c0_36, %c0_37], %105 {strides = array<i32>} : memref<1x8x32xf32, #tpu.memory_space<vmem>>, vector<1x8x32xf32>,
    return
  }
  func.func @transform_0(%arg0: i32) -> (i32, i32, i32) {
    %c0_i32 = arith.constant 0 : i32
    %c0_i32_0 = arith.constant 0 : i32
    %c0_i32_1 = arith.constant 0 : i32
    return %arg0, %c0_i32, %c0_i32_0 : i32, i32, i32
  }
  func.func @transform_1(%arg0: i32) -> (i32, i32, i32) {
    %c0_i32 = arith.constant 0 : i32
    %c0_i32_0 = arith.constant 0 : i32
    %c0_i32_1 = arith.constant 0 : i32
    return %arg0, %c0_i32, %c0_i32_0 : i32, i32, i32
  }
  func.func @transform_2(%arg0: i32) -> (i32, i32) {
    %c0_i32 = arith.constant 0 : i32
    %c0_i32_0 = arith.constant 0 : i32
    %c0_i32_1 = arith.constant 0 : i32
    return %c0_i32, %c0_i32_0 : i32, i32
  }
  func.func @transform_3(%arg0: i32) -> (i32, i32) {
    %c0_i32 = arith.constant 0 : i32
    %c0_i32_0 = arith.constant 0 : i32
    %c0_i32_1 = arith.constant 0 : i32
    return %c0_i32, %c0_i32_0 : i32, i32
  }
  func.func @transform_4(%arg0: i32) -> (i32, i32) {
    %c0_i32 = arith.constant 0 : i32
    %c0_i32_0 = arith.constant 0 : i32
    %c0_i32_1 = arith.constant 0 : i32
    return %c0_i32, %c0_i32_0 : i32, i32
  }
  func.func @transform_5(%arg0: i32) -> (i32, i32) {
    %c0_i32 = arith.constant 0 : i32
    %c0_i32_0 = arith.constant 0 : i32
    %c0_i32_1 = arith.constant 0 : i32
    return %c0_i32, %c0_i32_0 : i32, i32
  }
  func.func @transform_6(%arg0: i32) -> (i32, i32) {
    %c0_i32 = arith.constant 0 : i32
    %c0_i32_0 = arith.constant 0 : i32
    %c0_i32_1 = arith.constant 0 : i32
    return %c0_i32, %c0_i32_0 : i32, i32
  }
  func.func @transform_7(%arg0: i32) -> (i32, i32) {
    %c0_i32 = arith.constant 0 : i32
    %c0_i32_0 = arith.constant 0 : i32
    %c0_i32_1 = arith.constant 0 : i32
    return %c0_i32, %c0_i32_0 : i32, i32
  }
  func.func @transform_8(%arg0: i32) -> (i32, i32, i32) {
    %c0_i32 = arith.constant 0 : i32
    %c0_i32_0 = arith.constant 0 : i32
    %c0_i32_1 = arith.constant 0 : i32
    return %arg0, %c0_i32, %c0_i32_0 : i32, i32, i32
  }
}

</mosaic_0001>

<bundles_post_ra>
// kernel: tpu_custom_call.1
= control target key start
LH: loop header
LB: loop body
LE: loop exit
PB: predicated region body
PF: predicated region fallthrough
CT: control target
= control target key end

     0   :  { %s2064_s0 = inlined_call_operand.hbm [shape: bf16[2,8,32], index: 0, kind: input, shape index: {}]   ;;  %s2065_s1 = inlined_call_operand.hbm [shape: f32[2,1,8], index: 1, kind: input, shape index: {}]   ;;  %s2066_s2 = inlined_call_operand.hbm [shape: bf16[32,32], index: 2, kind: input, shape index: {}]   ;;  %s2067_s3 = inlined_call_operand.vmem [shape: bf16[1,32], index: 3, kind: input, shape index: {}]   ;;  %s2068_s4 = inlined_call_operand.hbm [shape: bf16[32,32], index: 4, kind: input, shape index: {}]   ;;  %s2069_s5 = inlined_call_operand.vmem [shape: bf16[1,32], index: 5, kind: input, shape index: {}]   ;;  %s2070_s6 = inlined_call_operand.hbm [shape: bf16[32,32], index: 6, kind: input, shape index: {}]   ;;  %s2071_s7 = inlined_call_operand.vmem [shape: bf16[1,32], index: 7, kind: input, shape index: {}]   ;;  %s2072_s8 = inlined_call_operand.hbm [shape: f32[2,8,32], index: 8, kind: output, shape index: {}]  }
   0x1   :  { %2077 = sst [smem:[#allocation17_spill]] %s2066_s2 }
   0x2   :  { %2078 = sst [smem:[#allocation18_spill]] %s2068_s4 }
   0x3   :  { %2079 = sst [smem:[#allocation19_spill]] %s2070_s6 }
   0x4   :  { %13 = vsyncpa [#allocation3], 0 }
   0x5   :  { %15 = vsyncpa [#allocation3 + $0x1], 0 }
   0x6   :  { %16 = vsyncpa [#allocation6], 0 }
   0x7   :  { %18 = vsyncpa [#allocation6 + $0x1], 0 }
   0x8   :  { %19 = vsyncpa [#allocation9], 0 }
   0x9   :  { %20 = vsyncpa [#allocation4], 0 }
   0xa   :  { %22 = vsyncpa [#allocation4 + $0x1], 0  ;;  %s1746_s27 = smov 0   ;;  %s1748_s28 = smov 0  }
   0xb   :  { %s1750_s29 = smov 0   ;;  %s1752_s30 = smov 0  }
   0xc LB: > { %s1767_s9 = sadd.s32 4294967295, %s1680_s30   ;;  %s1219_s10 = sadd.s32 4294967294, %s1680_s30   ;;  %s1680_s30 = sphi %s1752_s30, %s2103_s30   ;;  %s1676_s29 = sphi %s1750_s29, %s2102_s29   ;;  %s1672_s28 = sphi %s1748_s28, %s2101_s28   ;;  %s1668_s27 = sphi %s1746_s27, %s2100_s27  }
   0xd   : > { %p48_p0 = scmp.ne.s32.totalorder %s1672_s28, %s1668_s27  ;;  %p2073_p1 = scmp.eq.s32.totalorder %s1767_s9, 0 }
   0xe   : > { %p230_p3 = scmp.eq.s32.totalorder %s1219_s10, 1  ;;  %p1220_p5 = scmp.ge.s32.totalorder %s1680_s30, 1 }
   0xf   : > { %p1776_p4 = por %p2073_p1, %p48_p0  ;;  %p237_p7 = scmp.lt.s32.totalorder %s1680_s30, 3 }
  0x10   : > { %p1781_p6 = por %p230_p3, %p48_p0  ;;  %s1682_s14 = smov [#allocation7]  }
  0x11   : > { %s2080_s11 = scalar_select %p1776_p4, 1, 0 }
  0x12   : > { %s2081_s12 = scalar_select %p1781_p6, 1, 0 }
  0x13   : > { %p1786_p8 = pnand %p1220_p5, %p237_p7  ;;  %s249_s15 = sshll.u32 %s1682_s14, 4  ;;  %s250_s15 = int_to_ptr.vmem [resolvable:$true] %s249_s15 }
  0x14   : > { %s1683_s17 = smov [#allocation8]   ;;  %s1684_s19 = smov [#allocation10]  }
  0x15   : > { %s2082_s13 = scalar_select %p1786_p8, 1, 0 }
  0x16   : > { %p1371_p9 = pneg %p1786_p8  ;;  %s265_s18 = sshll.u32 %s1683_s17, 4  ;;  %s266_s18 = int_to_ptr.vmem [resolvable:$true] %s265_s18 }
  0x17   : > { %s281_s20 = sshll.u32 %s1684_s19, 4  ;;  %s1481_s21 = scalar_lea.vmem %s250_s15, 256  ;;  %s282_s20 = int_to_ptr.vmem [resolvable:$true] %s281_s20 }
  0x18   : > { %p1795_p11 = pnand %p1371_p9, %p2073_p1  ;;  %p1482_p13 = scmp.ne.s32.totalorder %s250_s15, %s1481_s21 }
  0x19   : > { %p1489_p5 = scmp.lt.s32.totalorder %s250_s15, %s250_s15  ;;  %p1490_p7 = scmp.lt.s32.totalorder %s1481_s21, %s1481_s21 }
  0x1a   : > { %p1472_p12 = pneg %p1795_p11 }
  0x1b   : > { %p1491_p9 = por %p1490_p7, %p1489_p5 }
  0x1c   : > { %p1484_p0 = pnand %p1482_p13, %p1472_p12 }
  0x1e   : > { %p1485_p3 = pneg %p1484_p0 }
  0x20   : > { %p1492_p10 = pnand %p1491_p9, %p1485_p3 }
  0x22   : > { %1495 = shalt.err (!%p1492_p10)
}
  0x23   : > { %s1685_s22 = smov 64   ;;  %s1686_s23 = smov 4  }
  0x24   : > { %s2084_s2 = sld [smem:[#allocation17_spill]]  ;;  %s1507_s26 = scalar_lea.vmem %s266_s18, 256 }
  0x25   : > { %p1508_p1 = scmp.ne.s32.totalorder %s266_s18, %s1507_s26  ;;  %p1515_p2 = scmp.lt.s32.totalorder %s266_s18, %s266_s18 }
  0x26   : > { %p1516_p6 = scmp.lt.s32.totalorder %s1507_s26, %s1507_s26 }
  0x27   : > { %p1510_p13 = pnand %p1508_p1, %p1472_p12 }
  0x28   : > { %p1517_p5 = por %p1516_p6, %p1515_p2 }
  0x29   : > { %p1511_p0 = pneg %p1510_p13 }
  0x2a   : > { %1374 = dma.hbm_to_vmem [thread:$0]  (!%p1795_p11), %s2084_s2, 256, %s250_s15, [#allocation6], %s1685_s22, %s1685_s22, %s1686_s23  }
  0x2b   : > { %p1518_p3 = pnand %p1517_p5, %p1511_p0 }
  0x2d   : > { %1521 = shalt.err (!%p1518_p3)
}
  0x2e   : > { %s2085_s4 = sld [smem:[#allocation18_spill]]  ;;  %s1533_s15 = scalar_lea.vmem %s282_s20, 256 }
  0x2f   : > { %p1534_p10 = scmp.ne.s32.totalorder %s282_s20, %s1533_s15  ;;  %p1541_p9 = scmp.lt.s32.totalorder %s282_s20, %s282_s20 }
  0x30   : > { %p1542_p13 = scmp.lt.s32.totalorder %s1533_s15, %s1533_s15 }
  0x31   : > { %p1536_p7 = pnand %p1534_p10, %p1472_p12 }
  0x32   : > { %p1543_p4 = por %p1542_p13, %p1541_p9 }
  0x33   : > { %p1537_p1 = pneg %p1536_p7 }
  0x34   : > { %1377 = dma.hbm_to_vmem [thread:$0]  (!%p1795_p11), %s2085_s4, 256, %s266_s18, [#allocation9], %s1685_s22, %s1685_s22, %s1686_s23  }
  0x35   : > { %p1544_p2 = pnand %p1543_p4, %p1537_p1 }
  0x37   : > { %1547 = shalt.err (!%p1544_p2)
}
  0x38   : > { %s2086_s6 = sld [smem:[#allocation19_spill]]  ;;  %s1826_s18 = sadd.s32 1, %s1680_s30  }
  0x39   : > { %s32_s21 = ssub.s32 %s1680_s30, %s1826_s18  ;;  %s35_s16 = sadd.s32 1, %s1676_s29 }
  0x3a   : > { %p33_p4 = scmp.eq.s32.totalorder %s32_s21, 0  ;;  %p42_p6 = scmp.ne.s32.totalorder %s1676_s29, %s1672_s28 }
  0x3b   : > { %p43_p12 = scmp.eq.s32.totalorder %s1680_s30, 0  ;;  %p1395_p0 = scmp.lt.s32.totalorder %s1680_s30, 2 }
  0x3c   : > { %s1836_s24 = scalar_select %p33_p4, %s1676_s29, %s35_s16  }
  0x3d   : > { %p44_p5 = por %p43_p12, %p42_p6  ;;  %p2087_p3 = scmp.eq.s32.totalorder %s1767_s9, 1 }
  0x3e   : > { %1380 = dma.hbm_to_vmem [thread:$0]  (!%p1795_p11), %s2086_s6, 256, %s282_s20, [#allocation9], %s1685_s22, %s1685_s22, %s1686_s23  }
  0x3f   : > { %p1840_p10 = por %p2087_p3, %p42_p6  ;;  %s1845_s26 = sand.u32 1, %s1676_s29  }
  0x40   : > { %s1226_s20 = sshll.u32 %s1680_s30, 6  ;;  %s1225_s22 = sshll.u32 %s1845_s26, 2 }
  0x41   : > { %s2088_s25 = scalar_select %p1840_p10, 1, 0 }
  0x42   : > { %s1852_s14 = scalar_lea.hbm %s2064_s0, %s1226_s20  ;;  %s302_s15 = scalar_lea.vmem [#allocation2], %s1225_s22 }
  0x43   : > { %s309_s17 = sshll.u32 %s302_s15, 4  ;;  %p1854_p11 = pnand %p1395_p0, %p44_p5  ;;  %s310_s17 = int_to_ptr.vmem [resolvable:$true] %s309_s17 }
  0x44   : > { %s299_s16 = scalar_lea.sflag [#allocation3], %s1845_s26  ;;  %s1548_s2 = scalar_lea.hbm %s1852_s14, 64 }
  0x45   : > { %p1549_p7 = scmp.ne.s32.totalorder %s1852_s14, %s1548_s2  ;;  %p1550_p1 = pneg %p1854_p11 }
  0x46   : > { %s1553_s23 = scalar_lea.hbm %s2064_s0, 128  ;;  %p1554_p2 = scmp.lt.s32.totalorder %s1852_s14, %s2064_s0 }
  0x47   : > { %p1551_p9 = pnand %p1550_p1, %p1549_p7  ;;  %p1555_p4 = scmp.lt.s32.totalorder %s1553_s23, %s1548_s2 }
  0x49   : > { %p1552_p13 = pneg %p1551_p9  ;;  %p1556_p6 = por %p1555_p4, %p1554_p2 }
  0x4b   : > { %p1557_p12 = pnand %p1556_p6, %p1552_p13 }
  0x4d   : > { %1560 = shalt.err (!%p1557_p12)
}
  0x4e   : > { %s1561_s21 = scalar_lea.vmem %s310_s17, 64  ;;  %s1687_s4 = smov [#allocation2]  }
  0x4f   : > { %p1562_p0 = scmp.ne.s32.totalorder %s310_s17, %s1561_s21  ;;  %s1566_s6 = sshll.u32 %s1687_s4, 4  ;;  %s1567_s6 = int_to_ptr.vmem [resolvable:$false] %s1566_s6 }
  0x50   : > { %s1568_s20 = scalar_lea.vmem %s1567_s6, 128  ;;  %p1569_p7 = scmp.lt.s32.totalorder %s310_s17, %s1567_s6 }
  0x51   : > { %p1564_p5 = pnand %p1562_p0, %p1550_p1  ;;  %p1570_p9 = scmp.lt.s32.totalorder %s1568_s20, %s1561_s21 }
  0x53   : > { %p1565_p3 = pneg %p1564_p5  ;;  %p1571_p10 = por %p1570_p9, %p1569_p7 }
  0x55   : > { %p1572_p8 = pnand %p1571_p10, %p1565_p3 }
  0x57   : > { %1575 = shalt.err (!%p1572_p8)
}
  0x58   : > { %1384 = dma.hbm_to_vmem [thread:$0]  (!%p1854_p11), %s1852_s14, 64, %s310_s17, %s299_s16  }
  0x59   : > { %s1227_s2 = sshll.u32 %s1680_s30, 4  ;;  %s319_s6 = scalar_lea.vmem [#allocation5], %s1845_s26 }
  0x5a   : > { %s1884_s4 = scalar_lea.hbm %s2065_s1, %s1227_s2  ;;  %s326_s21 = sshll.u32 %s319_s6, 4  ;;  %s327_s21 = int_to_ptr.vmem [resolvable:$true] %s326_s21 }
  0x5b   : > { %s2090_s10 = sand.u32 1, %s1680_s30   ;;  %s1576_s20 = scalar_lea.hbm %s1884_s4, 16 }
  0x5c   : > { %s317_s15 = scalar_lea.sflag [#allocation6], %s2090_s10  ;;  %p1577_p8 = scmp.ne.s32.totalorder %s1884_s4, %s1576_s20 }
  0x5d   : > { %s1581_s16 = scalar_lea.hbm %s2065_s1, 32  ;;  %p1582_p2 = scmp.lt.s32.totalorder %s1884_s4, %s2065_s1 }
  0x5e   : > { %p1579_p10 = pnand %p1577_p8, %p1550_p1  ;;  %p1583_p4 = scmp.lt.s32.totalorder %s1581_s16, %s1576_s20 }
  0x60   : > { %p1580_p13 = pneg %p1579_p10  ;;  %p1584_p6 = por %p1583_p4, %p1582_p2 }
  0x62   : > { %p1585_p12 = pnand %p1584_p6, %p1580_p13 }
  0x64   : > { %1588 = shalt.err (!%p1585_p12)
}
  0x65   : > { %s1589_s26 = scalar_lea.vmem %s327_s21, 16  ;;  %s1688_s23 = smov [#allocation5]  }
  0x66   : > { %p1590_p0 = scmp.ne.s32.totalorder %s327_s21, %s1589_s26  ;;  %s1594_s6 = sshll.u32 %s1688_s23, 4  ;;  %s1595_s6 = int_to_ptr.vmem [resolvable:$false] %s1594_s6 }
  0x67   : > { %s1596_s10 = scalar_lea.vmem %s1595_s6, 32  ;;  %p1597_p7 = scmp.lt.s32.totalorder %s327_s21, %s1595_s6 }
  0x68   : > { %p1592_p5 = pnand %p1590_p0, %p1550_p1  ;;  %p1598_p9 = scmp.lt.s32.totalorder %s1596_s10, %s1589_s26 }
  0x6a   : > { %p1593_p3 = pneg %p1592_p5  ;;  %p1599_p8 = por %p1598_p9, %p1597_p7 }
  0x6c   : > { %p1600_p10 = pnand %p1599_p8, %p1593_p3 }
  0x6e   : > { %1603 = shalt.err (!%p1600_p10)
}
  0x6f   : > { %1387 = dma.hbm_to_vmem [thread:$0]  (!%p1854_p11), %s1884_s4, 16, %s327_s21, %s317_s15  }
  0x70   : > { %p2091_p13 = scmp.ne.s32.totalorder %s2082_s13, 0 }
  0x71   : > { %s1910_s20 = sand.u32 (!%p2091_p13), 1, %s1672_s28   ;;  %p2092_p1 = scmp.ne.s32.totalorder (!%p2091_p13), %s2080_s11, 0 }
  0x72   : > { %335 = sbr.rel (%p2091_p13) target bundleno = 1311 (0x51f), region = 52  ;;  %s1229_s14 = sshll.u32 (!%p2091_p13), %s1910_s20, 2 }
  0x73   : > { %s338_s17 = scalar_lea.sflag (!%p2091_p13), [#allocation3], %s1910_s20  ;;  %s341_s16 = scalar_lea.vmem (!%p2091_p13), [#allocation2], %s1229_s14 }
  0x77   : > { %1647 = dma.done.wait (%p2092_p1), %s338_s17, 64  }
  0x78   : > { %1649 = vsyncadd (%p2092_p1), %s338_s17, 4294967232  ;;  %s346_s19 = sand.u32 1, %s1767_s9   ;;  %s349_s4 = scalar_lea.vmem [#allocation5], %s1910_s20 }
  0x79   : > { %s347_s13 = scalar_lea.sflag [#allocation6], %s346_s19 }
  0x7a   : > { %1651 = dma.done.wait (%p2092_p1), %s347_s13, 16  }
  0x7b   : > { %1653 = vsyncadd (%p2092_p1), %s347_s13, 4294967280  ;;  %p2093_p11 = scmp.eq.s32.totalorder %s1767_s9, 0 }
  0x7d   : > { %1655 = dma.done.wait (%p2093_p11), [#allocation6], 256   ;;  %p2094_p2 = pmov %p2093_p11 }
  0x7f   : > { %1657 = vsyncadd (%p2094_p2), [#allocation6], 4294967040  ;;  %p2095_p4 = pmov %p2094_p2 }
  0x80   : > { %p2096_p6 = pmov %p2094_p2 }
  0x81   : > { %1659 = dma.done.wait (%p2095_p4), [#allocation9], 512  }
  0x82   : > { %1661 = vsyncadd (%p2096_p6), [#allocation9], 4294966784  ;;  %v1689_v0 = vmov 0.0   ;;  %vm1690_vm0 = vmmov 0   ;;  %v1448_v1 = vld [vmem:[#allocation8 + $0x8] sm:$0xff]   ;;  %v1449_v2 = vld [vmem:[#allocation7 + $0x8] sm:$0xff]   ;;  %v466_v6 = vlaneseq }
  0x83   : > { %1289 = vmatprep.subr.bf16.mxu1 %v1689_v0  ;;  %1281 = vmatprep.subr.bf16.mxu0 %v1689_v0  ;;  %v1450_v3 = vld [vmem:[#allocation8] sm:$0xff]   ;;  %v1451_v4 = vld [vmem:[#allocation7] sm:$0xff]   ;;  %vm417_vm1 = vcmask 261120   ;;  %vm609_vm2 = vcmask 64512   ;;  %s1691_s22 = smov 112   ;;  %s1692_s26 = smov 120  }
  0x84   : > { %1293 = vmatprep.mubr.msk.bf16.mxu1 %vm1690_vm0, %v1689_v0  ;;  %1285 = vmatprep.mubr.msk.bf16.mxu0 %vm1690_vm0, %v1689_v0  ;;  %v399_v5 = vld [vmem:[%s341_s16] sm:$0xf]  ;;  %v467_v7 = vshrl.u32 %v466_v6, 7  ;;  %s1693_s23 = smov 104   ;;  %v1452_v28 = vld [vmem:[#allocation10 + $0x8] sm:$0xff]   ;;  %v1453_v29 = vld [vmem:[#allocation10] sm:$0xff]  }
  0x85   : > { %1290 = vmatpush3.bf16.msra.mxu1 %v1448_v1  ;;  %1282 = vmatpush3.bf16.msra.mxu0 %v1449_v2  ;;  %v528_v8 = vld [vmem:[%s2069_s5] sm:$0x1]  ;;  %vm671_vm3 = vcmask 1043456   ;;  %s1694_s14 = smov 6   ;;  %s1695_s17 = smov 2   ;;  %vm1073_vm4 = vcmask 15360  }
  0x86   : > { %1291 = vmatprep.subr.bf16.mxu1 %v1689_v0  ;;  %1283 = vmatprep.subr.bf16.mxu0 %v1689_v0  ;;  %v462_v9 = vld [vmem:[%s2067_s3] sm:$0x1]  ;;  %v1954_v10 = vsub.s32 0, %v467_v7  ;;  %v530_v11 = vpack.i.b16 %v528_v8, %v528_v8  ;;  %s1696_s16 = smov 12   ;;  %s1697_s19 = smov 4   ;;  %vm1075_vm5 = vcmask 31744  }
  0x87   : > { %v464_v12 = vpack.i.b16 %v462_v9, %v462_v9  ;;  %v1243_v39 = vld [vmem:[%s349_s4] ss:$0 sm:$0xff]  ;;  %s1698_s13 = smov 18   ;;  %s1699_s4 = smov 24   ;;  %vm1077_vm6 = vcmask 48128   ;;  %vm1080_vm7 = vcmask 113664  }
  0x88   : > { %v535_v13 = vrot.slane %v530_v11, %v1954_v10  ;;  %v594_v46 = vld [vmem:[%s2071_s7] sm:$0x1]  ;;  %s1233_s11 = sshll.u32 %s1910_s20, 3  ;;  %vm1082_vm8 = vcmask 162816   ;;  %s1253_s21 = sshll.u32 %s1767_s9, 7  ;;  %vm1084_vm9 = vcmask 211968  }
  0x89   : > { %1292 = vmatpush3.bf16.msra.mxu1 %v1450_v3  ;;  %1284 = vmatpush3.bf16.msra.mxu0 %v1451_v4  ;;  %v469_v17 = vrot.slane %v464_v12, %v1954_v10  ;;  %v596_v47 = vpack.i.b16 %v594_v46, %v594_v46  ;;  %s397_s15 = scalar_lea.vmem [#allocation11], %s1233_s11  ;;  %s1088_s9 = scalar_lea.sflag [#allocation4], %s1910_s20 }
  0x8a   : > { %1305 = vmatprep.subr.bf16.mxu1 %v1689_v0  ;;  %1297 = vmatprep.subr.bf16.mxu0 %v1689_v0  ;;  %s1101_s2 = sshll.u32 %s397_s15, 4  ;;  %p2097_p0 = scmp.ne.s32.totalorder %s2088_s25, 0  ;;  %s1102_s2 = int_to_ptr.vmem [resolvable:$true] %s1101_s2 }
  0x8b   : > { %v601_v48 = vrot.slane %v596_v47, %v1954_v10  ;;  %s1604_s6 = scalar_lea.vmem %s1102_s2, 128  ;;  %s1700_s10 = smov [#allocation11]  }
  0x8c   : > { %1294 = vmatmul.mubr.msk.bf16.vlgmr.msra.gmra.mxu1 %vm417_vm1, %v399_v5  ;;  %1286 = vmatmul.mubr.msk.bf16.vlgmr.msra.gmra.mxu0 %vm417_vm1, %v399_v5  ;;  %p1605_p12 = scmp.ne.s32.totalorder %s1102_s2, %s1604_s6 }
  0x8d   : > { %1307 = vmatprep.mubr.msk.bf16.mxu1 %vm1690_vm0, %v1689_v0  ;;  %1301 = vmatprep.mubr.msk.bf16.mxu0 %vm1690_vm0, %v1689_v0 }
  0x8e   : > { %1298 = vmatpush3.bf16.msra.mxu0 %v1452_v28  ;;  %p1606_p5 = pnand %p1605_p12, %p2097_p0 }
  0x8f   : > { %1299 = vmatprep.subr.bf16.mxu0 %v1689_v0 }
  0x90   : > { %p1607_p3 = pneg %p1606_p5 }
  0x92   : > { %1300 = vmatpush3.bf16.msra.mxu0 %v1453_v29 }
  0x93   : > { %1311 = vmatprep.subr.bf16.mxu0 %v1689_v0 }
  0x95   : > { %1302 = vmatmul.mubr.msk.bf16.vlgmr.msra.gmra.mxu0 %vm417_vm1, %v399_v5 }
  0x96   : > { %1313 = vmatprep.mubr.msk.bf16.mxu0 %vm1690_vm0, %v1689_v0 }
 0x14c   : > { %v521_v14 = vpop.f32.mrf.mxu1  ;;  %v455_v16 = vpop.f32.mrf.mxu0 }
 0x14d   : > { %v527_v15 = vpack.c.bf16 %v521_v14, %v521_v14  ;;  %v461_v18 = vpack.c.bf16 %v455_v16, %v455_v16 }
 0x14e   : > { %v1295_v19 = vpop.f32.mrf.mxu1  ;;  %v1287_v21 = vpop.f32.mrf.mxu0 }
 0x14f   : > { %v536_v20 = vadd.bf16 %v535_v13, %v527_v15  ;;  %v470_v23 = vadd.bf16 %v469_v17, %v461_v18 }
 0x150   : > { %v524_v22 = vpop.f32.mrf.mxu1  ;;  %v458_v24 = vpop.f32.mrf.mxu0 }
 0x151   : > { %830 = vrot.lane.b32.xlu1 %v536_v20, %s1691_s22  ;;  %719 = vrot.lane.b32.xlu0 %v536_v20, %s1692_s26  ;;  %v614_v25 = vsel %vm609_vm2, %v536_v20, 0 }
 0x152   : > { %v1296_v26 = vpop.f32.mrf.mxu1  ;;  %1306 = vmatpush3.bf16.xpose.msra.mxu1 %v614_v25  ;;  %v1288_v27 = vpop.f32.mrf.mxu0 }
 0x153   : > { %1317 = vmatprep.subr.bf16.mxu1 %v1689_v0 }
 0x155   : > { %828 = vrot.lane.b32.xlu1 %v470_v23, %s1691_s22  ;;  %716 = vrot.lane.b32.xlu0 %v470_v23, %s1692_s26  ;;  %v587_v49 = vpop.f32.mrf.mxu0 }
 0x156   : > { %v593_v50 = vpack.c.bf16 %v587_v49, %v587_v49 }
 0x157   : > { %v1303_v51 = vpop.f32.mrf.mxu0 }
 0x158   : > { %v602_v52 = vadd.bf16 %v601_v48, %v593_v50 }
 0x159   : > { %938 = vrot.lane.b32.xlu1 %v470_v23, %s1693_s23  ;;  %940 = vrot.lane.b32.xlu0 %v536_v20, %s1693_s23  ;;  %v590_v53 = vpop.f32.mrf.mxu0 }
 0x15a   : > { %1308 = vmatmul.mubr.msk.bf16.vlgmr.msra.gmra.mxu1 %vm609_vm2, %v470_v23  ;;  %v673_v54 = vsel %vm671_vm3, %v602_v52, 0 }
 0x15b   : > { %1319 = vmatprep.mubr.msk.bf16.mxu1 %vm1690_vm0, %v1689_v0  ;;  %v1304_v55 = vpop.f32.mrf.mxu0  ;;  %1312 = vmatpush3.bf16.msra.mxu0 %v673_v54 }
 0x15c   : > { %1323 = vmatprep.subr.bf16.mxu0 %v1689_v0 }
 0x1c3   : > { %v720_v30 = vpop.permute.xlu0 %719  ;;  %v831_v32 = vpop.permute.xlu1 %830 }
 0x1c4   : > { %v725_v31 = vsel %vm609_vm2, %v720_v30, 0  ;;  %v836_v34 = vsel %vm609_vm2, %v831_v32, 0 }
 0x1c5   : > { %1318 = vmatpush3.bf16.xpose.msra.mxu1 %v725_v31 }
 0x1c6   : > { %1329 = vmatprep.subr.bf16.mxu1 %v1689_v0 }
 0x1c7   : > { %v717_v33 = vpop.permute.xlu0 %716  ;;  %v829_v36 = vpop.permute.xlu1 %828 }
 0x1cb   : > { %v941_v35 = vpop.permute.xlu0 %940  ;;  %v939_v38 = vpop.permute.xlu1 %938 }
 0x1cc   : > { %1320 = vmatmul.mubr.msk.bf16.vlgmr.msra.gmra.mxu1 %vm609_vm2, %v717_v33  ;;  %v946_v37 = vsel %vm609_vm2, %v941_v35, 0 }
 0x1cd   : > { %1330 = vmatpush3.bf16.xpose.msra.mxu1 %v836_v34  ;;  %1331 = vmatprep.mubr.msk.bf16.mxu1 %vm1690_vm0, %v1689_v0 }
 0x1ce   : > { %1341 = vmatprep.subr.bf16.mxu1 %v1689_v0 }
 0x1d4   : > { %1332 = vmatmul.mubr.msk.bf16.vlgmr.msra.gmra.mxu1 %vm609_vm2, %v829_v36 }
 0x1d5   : > { %1342 = vmatpush3.bf16.xpose.msra.mxu1 %v946_v37  ;;  %1343 = vmatprep.mubr.msk.bf16.mxu1 %vm1690_vm0, %v1689_v0 }
 0x1dc   : > { %1344 = vmatmul.mubr.msk.bf16.vlgmr.msra.gmra.mxu1 %vm609_vm2, %v939_v38 }
 0x21a   : > { %v650_v40 = vpop.f32.mrf.mxu1 }
 0x21b   : > { %v651_v41 = vadd.f32 %v1243_v39, %v650_v40 }
 0x21c   : > { %v1309_v42 = vpop.f32.mrf.mxu1 }
 0x21d   : > { %v656_v43 = vsel %vm609_vm2, %v651_v41, -inf }
 0x21e   : > { %657 = vmax.xlane.f32.xlu0 %v656_v43  ;;  %v653_v44 = vpop.f32.mrf.mxu1 }
 0x220   : > { %v1310_v45 = vpop.f32.mrf.mxu1 }
 0x28c   : > { %v761_v56 = vpop.f32.mrf.mxu1 }
 0x28d   : > { %v762_v57 = vadd.f32 %v1243_v39, %v761_v56 }
 0x28e   : > { %v1321_v58 = vpop.f32.mrf.mxu1 }
 0x28f   : > { %v767_v59 = vsel %vm609_vm2, %v762_v57, -inf }
 0x290   : > { %768 = vmax.xlane.f32.xlu1 %v767_v59  ;;  %v764_v60 = vpop.f32.mrf.mxu1 }
 0x292   : > { %v1322_v61 = vpop.f32.mrf.mxu1 }
 0x294   : > { %v872_v62 = vpop.f32.mrf.mxu1 }
 0x295   : > { %v873_v63 = vadd.f32 %v1243_v39, %v872_v62 }
 0x296   : > { %v1333_v1 = vpop.f32.mrf.mxu1 }
 0x297   : > { %v878_v2 = vsel %vm609_vm2, %v873_v63, -inf }
 0x298   : > { %879 = vmax.xlane.f32.xlu0 %v878_v2  ;;  %v875_v3 = vpop.f32.mrf.mxu1 }
 0x29a   : > { %v1334_v4 = vpop.f32.mrf.mxu1 }
 0x29c   : > { %v982_v5 = vpop.f32.mrf.mxu1 }
 0x29d   : > { %v983_v6 = vadd.f32 %v1243_v39, %v982_v5 }
 0x29e   : > { %v1345_v7 = vpop.f32.mrf.mxu1 }
 0x29f   : > { %v988_v8 = vsel %vm609_vm2, %v983_v6, -inf }
 0x2a0   : > { %989 = vmax.xlane.f32.xlu0 %v988_v8  ;;  %v985_v9 = vpop.f32.mrf.mxu1 }
 0x2a2   : > { %v1346_v10 = vpop.f32.mrf.mxu1 }
 0x2a7   : > { %v658_v11 = vpop.xlane.xlu0 %657 }
 0x2a8   : > { %v659_v12 = vsub.f32 %v651_v41, %v658_v11 }
 0x2aa   : > { %v660_v13 = vmul.f32 1.442695, %v659_v12 }
 0x2ac   : > { %1454 = vpow2.f32 %v660_v13 }
 0x2b9   : > { %v1455_v14 = vpop.eup %1454 }
 0x2ba   : > { %v662_v15 = vsel %vm609_vm2, %v1455_v14, 0.0 }
 0x2bb   : > { %663 = vadd.xlane.f32.xlu1 %v662_v15 }
 0x2cc   : > { %780 = vrot.lane.b32.xlu1 %v602_v52, %s1692_s26 }
 0x319   : > { %v769_v16 = vpop.xlane.xlu1 %768 }
 0x31a   : > { %v770_v17 = vsub.f32 %v762_v57, %v769_v16 }
 0x31c   : > { %v771_v18 = vmul.f32 1.442695, %v770_v17 }
 0x31e   : > { %1456 = vpow2.f32 %v771_v18 }
 0x321   : > { %v880_v19 = vpop.xlane.xlu0 %879 }
 0x322   : > { %v881_v20 = vsub.f32 %v873_v63, %v880_v19 }
 0x324   : > { %v882_v21 = vmul.f32 1.442695, %v881_v20 }
 0x326   : > { %1458 = vpow2.f32 %v882_v21 }
 0x329   : > { %v990_v22 = vpop.xlane.xlu0 %989 }
 0x32a   : > { %v991_v23 = vsub.f32 %v983_v6, %v990_v22 }
 0x32b   : > { %v1457_v24 = vpop.eup %1456 }
 0x32c   : > { %v992_v25 = vmul.f32 1.442695, %v991_v23  ;;  %v773_v26 = vsel %vm609_vm2, %v1457_v24, 0.0 }
 0x32d   : > { %774 = vadd.xlane.f32.xlu0 %v773_v26 }
 0x32e   : > { %1460 = vpow2.f32 %v992_v25 }
 0x333   : > { %v1459_v27 = vpop.eup %1458 }
 0x334   : > { %v884_v28 = vsel %vm609_vm2, %v1459_v27, 0.0 }
 0x335   : > { %885 = vadd.xlane.f32.xlu1 %v884_v28 }
 0x33b   : > { %v1461_v29 = vpop.eup %1460 }
 0x33c   : > { %v994_v30 = vsel %vm609_vm2, %v1461_v29, 0.0 }
 0x33d   : > { %995 = vadd.xlane.f32.xlu0 %v994_v30 }
 0x344   : > { %v664_v31 = vpop.xlane.xlu1 %663 }
 0x345   : > { %1462 = vrcp.f32 %v664_v31 }
 0x346   : > { %1000 = vrot.lane.b32.xlu1 %v602_v52, %s1693_s23  ;;  %s2026_s23 = scalar_lea.hbm %s2072_s8, %s1253_s21 }
 0x348   : > { %v781_v33 = vpop.permute.xlu1 %780 }
 0x349   : > { %v786_v36 = vsel %vm671_vm3, %v781_v33, 0 }
 0x352   : > { %v1463_v32 = vpop.eup %1462 }
 0x353   : > { %890 = vrot.lane.b32.xlu0 %v602_v52, %s1691_s22  ;;  %v666_v34 = vmul.f32 %v1463_v32, %v1455_v14 }
 0x355   : > { %v667_v35 = vpack.c.bf16 %v666_v34, %v666_v34 }
 0x357   : > { %1314 = vmatmul.mubr.msk.bf16.vlgmr.msra.gmra.mxu0 %vm609_vm2, %v667_v35 }
 0x358   : > { %1324 = vmatpush3.bf16.msra.mxu0 %v786_v36  ;;  %1325 = vmatprep.mubr.msk.bf16.mxu0 %vm1690_vm0, %v1689_v0 }
 0x359   : > { %1335 = vmatprep.subr.bf16.mxu0 %v1689_v0 }
 0x3b6   : > { %v775_v37 = vpop.xlane.xlu0 %774 }
 0x3b7   : > { %1464 = vrcp.f32 %v775_v37 }
 0x3be   : > { %v886_v38 = vpop.xlane.xlu1 %885 }
 0x3bf   : > { %1466 = vrcp.f32 %v886_v38 }
 0x3c2   : > { %v1001_v47 = vpop.permute.xlu1 %1000 }
 0x3c3   : > { %v1006_v49 = vsel %vm671_vm3, %v1001_v47, 0 }
 0x3c4   : > { %v1465_v39 = vpop.eup %1464 }
 0x3c5   : > { %v777_v40 = vmul.f32 %v1465_v39, %v1457_v24 }
 0x3c6   : > { %v996_v41 = vpop.xlane.xlu0 %995 }
 0x3c7   : > { %1468 = vrcp.f32 %v996_v41  ;;  %v778_v42 = vpack.c.bf16 %v777_v40, %v777_v40 }
 0x3c9   : > { %1326 = vmatmul.mubr.msk.bf16.vlgmr.msra.gmra.mxu0 %vm609_vm2, %v778_v42 }
 0x3ca   : > { %v891_v43 = vpop.permute.xlu0 %890  ;;  %1337 = vmatprep.mubr.msk.bf16.mxu0 %vm1690_vm0, %v1689_v0 }
 0x3cb   : > { %v896_v44 = vsel %vm671_vm3, %v891_v43, 0 }
 0x3cc   : > { %v1467_v45 = vpop.eup %1466  ;;  %1336 = vmatpush3.bf16.msra.mxu0 %v896_v44 }
 0x3cd   : > { %1347 = vmatprep.subr.bf16.mxu0 %v1689_v0  ;;  %v888_v46 = vmul.f32 %v1467_v45, %v1459_v27 }
 0x3cf   : > { %v889_v48 = vpack.c.bf16 %v888_v46, %v888_v46 }
 0x3d1   : > { %1338 = vmatmul.mubr.msk.bf16.vlgmr.msra.gmra.mxu0 %vm609_vm2, %v889_v48 }
 0x3d2   : > { %1348 = vmatpush3.bf16.msra.mxu0 %v1006_v49  ;;  %1349 = vmatprep.mubr.msk.bf16.mxu0 %vm1690_vm0, %v1689_v0 }
 0x3d4   : > { %v1469_v50 = vpop.eup %1468 }
 0x3d5   : > { %v998_v51 = vmul.f32 %v1469_v50, %v1461_v29 }
 0x3d7   : > { %v999_v52 = vpack.c.bf16 %v998_v51, %v998_v51 }
 0x3d9   : > { %1350 = vmatmul.mubr.msk.bf16.vlgmr.msra.gmra.mxu0 %vm609_vm2, %v999_v52 }
 0x417   : > { %v709_v53 = vpop.f32.mrf.mxu0 }
 0x418   : > { %1061 = vrot.lane.b32.xlu0 %v709_v53, %s1694_s14 }
 0x419   : > { %v1315_v54 = vpop.f32.mrf.mxu0 }
 0x41b   : > { %v712_v55 = vpop.f32.mrf.mxu0 }
 0x41d   : > { %v1316_v56 = vpop.f32.mrf.mxu0 }
 0x489   : > { %v822_v57 = vpop.f32.mrf.mxu0 }
 0x48a   : > { %1049 = vrot.lane.b32.xlu1 %v822_v57, %s1695_s17  ;;  %v1062_v6 = vpop.permute.xlu0 %1061 }
 0x48b   : > { %v1327_v58 = vpop.f32.mrf.mxu0 }
 0x48d   : > { %v825_v59 = vpop.f32.mrf.mxu0 }
 0x48e   : > { %1064 = vrot.lane.b32.xlu1 %v822_v57, %s1696_s16 }
 0x48f   : > { %v1328_v60 = vpop.f32.mrf.mxu0 }
 0x491   : > { %v932_v0 = vpop.f32.mrf.mxu0 }
 0x492   : > { %1053 = vrot.lane.b32.xlu0 %v932_v0, %s1697_s19 }
 0x493   : > { %v1339_v61 = vpop.f32.mrf.mxu0 }
 0x495   : > { %v935_v62 = vpop.f32.mrf.mxu0 }
 0x496   : > { %1067 = vrot.lane.b32.xlu0 %v932_v0, %s1698_s13 }
 0x497   : > { %v1340_v63 = vpop.f32.mrf.mxu0 }
 0x499   : > { %v1042_v1 = vpop.f32.mrf.mxu0 }
 0x49a   : > { %1057 = vrot.lane.b32.xlu1 %v1042_v1, %s1694_s14  ;;  %s1608_s14 = sshll.u32 %s1700_s10, 4  ;;  %s1609_s14 = int_to_ptr.vmem [resolvable:$false] %s1608_s14 }
 0x49b   : > { %v1351_v2 = vpop.f32.mrf.mxu0  ;;  %s1610_s17 = scalar_lea.vmem %s1609_s14, 256  ;;  %p1611_p7 = scmp.lt.s32.totalorder %s1102_s2, %s1609_s14 }
 0x49c   : > { %p1612_p9 = scmp.lt.s32.totalorder %s1610_s17, %s1604_s6 }
 0x49d   : > { %v1045_v3 = vpop.f32.mrf.mxu0 }
 0x49e   : > { %1070 = vrot.lane.b32.xlu1 %v1042_v1, %s1699_s4  ;;  %p1613_p8 = por %p1612_p9, %p1611_p7 }
 0x49f   : > { %v1352_v4 = vpop.f32.mrf.mxu0 }
 0x4a0   : > { %p1614_p10 = pnand %p1613_p8, %p1607_p3 }
 0x4fc   : > { %v1050_v5 = vpop.permute.xlu1 %1049 }
 0x4fd   : > { %v1074_v9 = vsel %vm1073_vm4, %v709_v53, %v1050_v5 }
 0x500   : > { %v1065_v7 = vpop.permute.xlu1 %1064 }
 0x504   : > { %v1054_v8 = vpop.permute.xlu0 %1053 }
 0x505   : > { %v1076_v10 = vsel %vm1075_vm5, %v1074_v9, %v1054_v8 }
 0x508   : > { %v1068_v14 = vpop.permute.xlu0 %1067 }
 0x50c   : > { %v1058_v11 = vpop.permute.xlu1 %1057 }
 0x50d   : > { %v1078_v12 = vsel %vm1077_vm6, %v1076_v10, %v1058_v11 }
 0x50e   : > { %v1079_v13 = vsel %vm609_vm2, %v1078_v12, %v1062_v6 }
 0x50f   : > { %v1081_v15 = vsel %vm1080_vm7, %v1079_v13, %v1065_v7 }
 0x510   : > { %v1083_v16 = vsel %vm1082_vm8, %v1081_v15, %v1068_v14  ;;  %v1071_v17 = vpop.permute.xlu1 %1070 }
 0x511   : > { %v1085_v18 = vsel %vm1084_vm9, %v1083_v16, %v1071_v17 }
 0x512   : > { %1086 = vst.msk [vmem:[%s397_s15] sm:$0xff] %vm417_vm1, %v1085_v18 }
 0x513   : > { %1617 = shalt.err (!%p1614_p10)
}
 0x514   : > { %s1618_s16 = scalar_lea.hbm %s2026_s23, 128  ;;  %s1622_s13 = scalar_lea.hbm %s2072_s8, 256 }
 0x515   : > { %p1619_p13 = scmp.ne.s32.totalorder %s2026_s23, %s1618_s16  ;;  %p1623_p2 = scmp.lt.s32.totalorder %s2026_s23, %s2072_s8 }
 0x516   : > { %p1624_p4 = scmp.lt.s32.totalorder %s1622_s13, %s1618_s16 }
 0x517   : > { %p1620_p1 = pnand %p1619_p13, %p2097_p0 }
 0x518   : > { %p1625_p6 = por %p1624_p4, %p1623_p2 }
 0x519   : > { %p1621_p11 = pneg %p1620_p1 }
 0x51b   : > { %p1626_p12 = pnand %p1625_p6, %p1621_p11 }
 0x51d   : > { %1629 = shalt.err (!%p1626_p12)
}
 0x51e   : > { %1369 = dma.vmem_to_hbm [thread:$0]  (%p2097_p0), %s1102_s2, 128, %s2026_s23, %s1088_s9  }
 0x51f PF: > { %s1113_s21 = sand.u32 1, %s1668_s27   ;;  %p2098_p5 = scmp.ne.s32.totalorder %s2081_s12, 0 }
 0x520   : > { %p2099_p3 = scmp.ge.s32.totalorder %s1680_s30, 2  ;;  %s1114_s15 = scalar_lea.sflag [#allocation4], %s1113_s21 }
 0x522   : > { %p1389_p7 = pnand %p2099_p3, %p2098_p5 }
 0x524   : > { %p1390_p9 = pneg %p1389_p7 }
 0x526   : > { %1663 = dma.done.wait (%p1390_p9), %s1114_s15, 128  }
 0x527   : > { %1665 = vsyncadd (%p1390_p9), %s1114_s15, 4294967168  ;;  %p25_p8 = scmp.ge.s32.totalorder %s1826_s18, 4   ;;  %s2100_s27 = smov %s1672_s28 }
 0x528   : > { %s2101_s28 = smov %s1676_s29  ;;  %s2102_s29 = smov %s1836_s24 }
 0x529   : > { %s2103_s30 = smov %s1826_s18  ;;  %27 = sbr.rel (!%p25_p8) target bundleno = 12 (0xc), region = 122 }
 0x52e   :  { %1119 = vsyncpa [#allocation3], 1 }
 0x52f   :  { %1121 = vsyncpa [#allocation3 + $0x1], 1 }
 0x530   :  { %1122 = vsyncpa [#allocation6], 1 }
 0x531   :  { %1124 = vsyncpa [#allocation6 + $0x1], 1 }
 0x532   :  { %1125 = vsyncpa [#allocation9], 1 }
 0x533   :  { %1126 = vsyncpa [#allocation4], 1 }
 0x534   :  { %1128 = vsyncpa [#allocation4 + $0x1], 1 }

</bundles_post_ra>
